<compile_context>
chip_gen: v5e
topology: v5e:2x2
jax: 0.10.0
libtpu: 0.0.40
codegen_flags: <defaults>
</compile_context>

<pallas_src>
import jax
import jax.numpy as jnp
from jax.experimental import pallas as pl
from jax.experimental.pallas import tpu as pltpu


# ---- packed-parameter layout: one (64, 16) f32 buffer, 8-row aligned -------
# rows  0:16, lanes 0:2  -> fc1 weight, (out, in) = (16, 2)
# rows 16:32, lanes 0:16 -> fc2 weight, (out, in) = (16, 16)
# rows 32:40, lanes 0:16 -> head weight, (out, in) = (8, 16)
#                           row 0 = mean, row 1 = log_std, rows 2:8 zero pad
# rows 40:56, lane  0    -> fc1 bias as a column, (16, 1)
# rows 40:56, lane  1    -> fc2 bias as a column, (16, 1)
# rows 40:48, lane  2    -> head bias column, (8, 1): [b_mean, b_log_std, 0...]
PACKED_ROWS = 64
PACKED_COLS = 16

LANE = 128  # TPU lane width


def policy_kernel(x_ref, p_ref, out_ref):
    # x_ref: (2, bb) batch-on-lanes state tile; out_ref: (2, bb) [mean; log_std].
    x0 = x_ref[0:1, :]                      # (1, bb) position row (sublane bcast)
    x1 = x_ref[1:2, :]                      # (1, bb) velocity row

    w1 = p_ref[0:16, 0:2]                   # (16, 2)  fc1 weight (out, in)
    w2 = p_ref[16:32, :]                    # (16, 16) fc2 weight (out, in)
    wh = p_ref[32:40, :]                    # (8, 16)  fused head weight (zero-padded)
    b1 = p_ref[40:56, 0:1]                  # (16, 1)
    b2 = p_ref[40:56, 1:2]                  # (16, 1)
    bh = p_ref[40:48, 2:3]                  # (8, 1)

    # fc1: K=2 contraction on the VPU as two outer-product FMAs + bias, ReLU.
    h1 = jnp.maximum(w1[:, 0:1] * x0 + w1[:, 1:2] * x1 + b1, 0.0)      # (16, bb)

    # fc2: (16, 16) x (16, bb) on the MXU, batch streaming along lanes.
    h2 = jnp.maximum(
        jnp.dot(w2, h1, preferred_element_type=jnp.float32) + b2, 0.0)  # (16, bb)

    # Fused heads: (8, 16) x (16, bb); only rows 0:2 are real (mean, log_std).
    head = jnp.dot(wh, h2, preferred_element_type=jnp.float32) + bh     # (8, bb)
    out_ref[...] = head[0:2, :].astype(out_ref.dtype)                   # (2, bb)


def pack_params(params):
    """Pack all weights/biases into one (64, 16) f32 buffer (single DMA).

    `params` weights are stored (in_features, out_features); we transpose to
    PyTorch (out, in) orientation for the batch-on-lanes kernel.
    """
    p = jnp.zeros((PACKED_ROWS, PACKED_COLS), jnp.float32)
    p = p.at[0:16, 0:2].set(params["w1"].T)                              # (16, 2)
    p = p.at[16:32, :].set(params["w2"].T)                               # (16, 16)
    wh = jnp.concatenate([params["wm"], params["ws"]], axis=1).T         # (2, 16)
    p = p.at[32:34, :].set(wh)                                           # rows 34:40 stay 0
    p = p.at[40:56, 0:1].set(params["b1"].T)                             # (16, 1)
    p = p.at[40:56, 1:2].set(params["b2"].T)                             # (16, 1)
    bh = jnp.concatenate([params["bm"], params["bs"]], axis=1).T         # (2, 1)
    p = p.at[40:42, 2:3].set(bh)                                         # rows 42:48 stay 0
    return p


def _round_up(x, m):
    return ((x + m - 1) // m) * m


def policy_forward(state, packed_params, *, block_b=32768):
    """state: (B, 2) f32. packed_params: (64, 16) f32 from pack_params().
    Returns (mean, log_std), each (B, 1)."""
    B = state.shape[0]

    # Lane-dense padded batch (never a whole-batch block: pad + tile instead).
    b_lanes = _round_up(B, LANE)
    blk = _round_up(min(block_b, b_lanes), LANE)
    n_steps = max(1, pl.cdiv(b_lanes, blk))
    if b_lanes >= 2 * LANE:
        n_steps = max(n_steps, 2)          # v7x: give both TensorCores work
    bb = _round_up(pl.cdiv(b_lanes, n_steps), LANE)
    b_pad = n_steps * bb
    grid = (n_steps,)

    # (2, B_pad) batch-on-lanes input; zero-pad the tail lanes.
    x = jnp.pad(state.T.astype(jnp.float32), ((0, 0), (0, b_pad - B)))

    flops = 2 * b_pad * (2 * 16 + 16 * 16 + 16 * 2)
    bytes_accessed = x.size * 4 + packed_params.size * 4 + 2 * b_pad * 4

    out = pl.pallas_call(
        policy_kernel,
        out_shape=jax.ShapeDtypeStruct((2, b_pad), jnp.float32),
        grid=grid,
        in_specs=[
            pl.BlockSpec((2, bb), lambda i: (0, i)),                       # state tile
            pl.BlockSpec((PACKED_ROWS, PACKED_COLS), lambda i: (0, 0)),     # params resident
        ],
        out_specs=pl.BlockSpec((2, bb), lambda i: (0, i)),
        compiler_params=pltpu.CompilerParams(
            dimension_semantics=("parallel",)),
        cost_estimate=pl.CostEstimate(
            flops=flops, transcendentals=0, bytes_accessed=bytes_accessed),
    )(x, packed_params)

    # Row splits of the (2, B_pad) slab are contiguous copies.
    mean = out[0, :B].reshape(B, 1)
    log_std = out[1, :B].reshape(B, 1)
    return mean, log_std


def init_params(key):
    """Deterministic init mimicking PyTorch Linear default (uniform +/-1/sqrt(fan_in)).
    Weights stored (in_features, out_features) for the pure-JAX reference."""
    def linear(key, fan_in, fan_out):
        kw, kb = jax.random.split(key)
        bound = 1.0 / jnp.sqrt(jnp.float32(fan_in))
        w = jax.random.uniform(kw, (fan_in, fan_out), jnp.float32, -bound, bound)
        b = jax.random.uniform(kb, (1, fan_out), jnp.float32, -bound, bound)
        return w, b

    k1, k2, k3, k4 = jax.random.split(key, 4)
    w1, b1 = linear(k1, 2, 16)
    w2, b2 = linear(k2, 16, 16)
    wm, bm = linear(k3, 16, 1)
    ws, bs = linear(k4, 16, 1)
    return dict(w1=w1, b1=b1, w2=w2, b2=b2, wm=wm, bm=bm, ws=ws, bs=bs)


def reference_forward(state, params):
    h1 = jnp.maximum(state @ params["w1"] + params["b1"], 0.0)
    h2 = jnp.maximum(h1 @ params["w2"] + params["b2"], 0.0)
    mean = h2 @ params["wm"] + params["bm"]
    log_std = h2 @ params["ws"] + params["bs"]
    return mean, log_std


if __name__ == "__main__":
    key = jax.random.PRNGKey(0)
    kp, kx = jax.random.split(key)
    params = init_params(kp)
    packed = pack_params(params)

    B = 8  # small batch of MountainCarContinuous states (position, velocity)
    state = jax.random.uniform(kx, (B, 2), jnp.float32, -1.0, 1.0)

    mean, log_std = policy_forward(state, packed)
    jax.block_until_ready((mean, log_std))

    ref_mean, ref_log_std = reference_forward(state, params)
    assert mean.shape == (B, 1) and log_std.shape == (B, 1)
    assert jnp.allclose(mean, ref_mean, atol=1e-5, rtol=1e-5)
    assert jnp.allclose(log_std, ref_log_std, atol=1e-5, rtol=1e-5)

    # Also exercise a multi-step grid (padded, >=2 parallel steps).
    B2 = 300
    state2 = jax.random.uniform(jax.random.PRNGKey(1), (B2, 2), jnp.float32, -1.0, 1.0)
    m2, s2 = policy_forward(state2, packed)
    jax.block_until_ready((m2, s2))
    rm2, rs2 = reference_forward(state2, params)
    assert jnp.allclose(m2, rm2, atol=1e-5, rtol=1e-5)
    assert jnp.allclose(s2, rs2, atol=1e-5, rtol=1e-5)

    print("KERNEL_OK")
</pallas_src>

<mosaic_0001>
module attributes {stable_mosaic.version = 11 : i64} {
  func.func @policy_kernel(%arg0: i32, %arg1: memref<2x128xf32, #tpu.memory_space<vmem>>, %arg2: memref<64x16xf32, #tpu.memory_space<vmem>>, %arg3: memref<2x128xf32, #tpu.memory_space<vmem>>) attributes {dimension_semantics = [#tpu.dimension_semantics<parallel>], iteration_bounds = array<i64: 1>, scalar_prefetch = 0 : i64, scratch_operands = 0 : i64, tpu.core_type = #tpu.core_type<tc>, window_params = [{transform_indices = @transform_0, window_bounds = array<i64: 2, 128>}, {pipeline_mode = #tpu.pipeline_mode<synchronous>, transform_indices = @transform_1, window_bounds = array<i64: 64, 16>}, {transform_indices = @transform_2, window_bounds = array<i64: 2, 128>}]} {
    %c0 = arith.constant 0 : index
    %c0_0 = arith.constant 0 : index
    %0 = vector.load %arg1[%c0, %c0_0] : memref<2x128xf32, #tpu.memory_space<vmem>>, vector<1x128xf32>
    %c1 = arith.constant 1 : index
    %c0_1 = arith.constant 0 : index
    %1 = vector.load %arg1[%c1, %c0_1] : memref<2x128xf32, #tpu.memory_space<vmem>>, vector<1x128xf32>
    %c0_2 = arith.constant 0 : index
    %c0_3 = arith.constant 0 : index
    %2 = vector.load %arg2[%c0_2, %c0_3] : memref<64x16xf32, #tpu.memory_space<vmem>>, vector<16x2xf32>
    %c16 = arith.constant 16 : index
    %c0_4 = arith.constant 0 : index
    %3 = vector.load %arg2[%c16, %c0_4] : memref<64x16xf32, #tpu.memory_space<vmem>>, vector<16x16xf32>
    %c32 = arith.constant 32 : index
    %c0_5 = arith.constant 0 : index
    %4 = vector.load %arg2[%c32, %c0_5] : memref<64x16xf32, #tpu.memory_space<vmem>>, vector<8x16xf32>
    %c40 = arith.constant 40 : index
    %c0_6 = arith.constant 0 : index
    %5 = vector.load %arg2[%c40, %c0_6] : memref<64x16xf32, #tpu.memory_space<vmem>>, vector<16x1xf32>
    %c40_7 = arith.constant 40 : index
    %c1_8 = arith.constant 1 : index
    %6 = vector.load %arg2[%c40_7, %c1_8] : memref<64x16xf32, #tpu.memory_space<vmem>>, vector<16x1xf32>
    %c40_9 = arith.constant 40 : index
    %c2 = arith.constant 2 : index
    %7 = vector.load %arg2[%c40_9, %c2] : memref<64x16xf32, #tpu.memory_space<vmem>>, vector<8x1xf32>
    %8 = vector.extract_strided_slice %2 {offsets = [0, 0], sizes = [16, 1], strides = [1, 1]} : vector<16x2xf32> to vector<16x1xf32>
    %9 = vector.broadcast %8 : vector<16x1xf32> to vector<16x128xf32>
    %10 = vector.broadcast %0 : vector<1x128xf32> to vector<16x128xf32>
    %11 = arith.mulf %9, %10 : vector<16x128xf32>
    %12 = vector.extract_strided_slice %2 {offsets = [0, 1], sizes = [16, 1], strides = [1, 1]} : vector<16x2xf32> to vector<16x1xf32>
    %13 = vector.broadcast %12 : vector<16x1xf32> to vector<16x128xf32>
    %14 = vector.broadcast %1 : vector<1x128xf32> to vector<16x128xf32>
    %15 = arith.mulf %13, %14 : vector<16x128xf32>
    %16 = arith.addf %11, %15 : vector<16x128xf32>
    %17 = vector.broadcast %5 : vector<16x1xf32> to vector<16x128xf32>
    %18 = arith.addf %16, %17 : vector<16x128xf32>
    %cst = arith.constant 0.000000e+00 : f32
    %19 = vector.broadcast %cst : f32 to vector<16x128xf32>
    %20 = arith.maximumf %18, %19 : vector<16x128xf32>
    %cst_10 = arith.constant dense<0.000000e+00> : vector<16x128xf32>
    %21 = tpu.matmul %3, %20, %cst_10 {dimension_numbers = #tpu.dot_dimension_numbers<[1], [0], [0], [1], [0, 0, 1, 1], [], []>} : vector<16x16xf32>, vector<16x128xf32>, vector<16x128xf32> -> vector<16x128xf32>
    %22 = vector.broadcast %6 : vector<16x1xf32> to vector<16x128xf32>
    %23 = arith.addf %21, %22 : vector<16x128xf32>
    %cst_11 = arith.constant 0.000000e+00 : f32
    %24 = vector.broadcast %cst_11 : f32 to vector<16x128xf32>
    %25 = arith.maximumf %23, %24 : vector<16x128xf32>
    %cst_12 = arith.constant dense<0.000000e+00> : vector<8x128xf32>
    %26 = tpu.matmul %4, %25, %cst_12 {dimension_numbers = #tpu.dot_dimension_numbers<[1], [0], [0], [1], [0, 0, 1, 1], [], []>} : vector<8x16xf32>, vector<16x128xf32>, vector<8x128xf32> -> vector<8x128xf32>
    %27 = vector.broadcast %7 : vector<8x1xf32> to vector<8x128xf32>
    %28 = arith.addf %26, %27 : vector<8x128xf32>
    %29 = vector.extract_strided_slice %28 {offsets = [0, 0], sizes = [2, 128], strides = [1, 1]} : vector<8x128xf32> to vector<2x128xf32>
    %c0_13 = arith.constant 0 : index
    %c0_14 = arith.constant 0 : index
    %30 = vector.load %arg3[%c0_13, %c0_14] : memref<2x128xf32, #tpu.memory_space<vmem>>, vector<2x128xf32>
    tpu.vector_store %arg3[%c0_13, %c0_14], %29 {strides = array<i32>} : memref<2x128xf32, #tpu.memory_space<vmem>>, vector<2x128xf32>,
    return
  }
  func.func @transform_0(%arg0: i32) -> (i32, i32) {
    %c0_i32 = arith.constant 0 : i32
    %c0_i32_0 = arith.constant 0 : i32
    return %c0_i32, %arg0 : i32, i32
  }
  func.func @transform_1(%arg0: i32) -> (i32, i32) {
    %c0_i32 = arith.constant 0 : i32
    %c0_i32_0 = arith.constant 0 : i32
    %c0_i32_1 = arith.constant 0 : i32
    return %c0_i32, %c0_i32_0 : i32, i32
  }
  func.func @transform_2(%arg0: i32) -> (i32, i32) {
    %c0_i32 = arith.constant 0 : i32
    %c0_i32_0 = arith.constant 0 : i32
    return %c0_i32, %arg0 : i32, i32
  }
}

</mosaic_0001>

<bundles_post_ra>
// kernel: tpu_custom_call.1
= control target key start
LH: loop header
LB: loop body
LE: loop exit
PB: predicated region body
PF: predicated region fallthrough
CT: control target
= control target key end

     0   :  { %v189_v2 = vmov 0   ;;  %s241_s0 = inlined_call_operand.vmem [shape: f32[2,128], index: 0, kind: input, shape index: {}]   ;;  %s242_s1 = inlined_call_operand.vmem [shape: f32[64,16], index: 1, kind: input, shape index: {}]   ;;  %s243_s2 = inlined_call_operand.hbm [shape: f32[2,128], index: 2, kind: output, shape index: {}]  }
   0x1   :  { %v15_v0 = vld [vmem:[%s242_s1 + $0x8] sm:$0xff]  ;;  %v14_v1 = vld [vmem:[%s242_s1] sm:$0xff]  ;;  %156 = vset.pattern.permute.xlu1 %v189_v2  ;;  %154 = vset.pattern.permute.xlu0 %v189_v2 }
   0x2   :  { %28 = vperm.xlu0 %154, %v15_v0   ;;  %23 = vperm.xlu1 %156, %v14_v1  }
   0x3   :  { %7 = vsyncpa [#allocation3], 0  ;;  %v20_v3 = vld [vmem:[%s242_s1 + $0x30] sm:$0xff]  ;;  %158 = vset.pattern.permute.xlu2 %v189_v2  ;;  %v19_v4 = vld [vmem:[%s242_s1 + $0x28] sm:$0xff]  ;;  %v190_v5 = vmov 1   ;;  %vm69_vm0 = vcmask 130048  }
   0x4   :  { %54 = vperm.xlu2 %158, %v20_v3   ;;  %v161_v9 = vld [vmem:[%s241_s0] ss:$0 sm:$0xff]  ;;  %v162_v10 = vld [vmem:[%s241_s0 + $0x1] ss:$0 sm:$0xff]  ;;  %v17_v24 = vld [vmem:[%s242_s1 + $0x18] sm:$0xff]  ;;  %v191_v26 = vmov 2  }
   0x5   :  { %v16_v25 = vld [vmem:[%s242_s1 + $0x10] sm:$0xff]  ;;  %v18_v35 = vld [vmem:[%s242_s1 + $0x20] sm:$0xff]  ;;  %s192_s26 = smov [#allocation2]   ;;  %s136_s30 = sshll.u32 %s243_s2, 4  ;;  %s137_s30 = int_to_ptr.hbm [resolvable:$true] %s136_s30 }
   0x6   :  { %s134_s27 = sshll.u32 %s192_s26, 4  ;;  %s135_s27 = int_to_ptr.vmem [resolvable:$true] %s134_s27 }
   0xa   :  { %155 = vset.pattern.permute.xlu0 %v190_v5  ;;  %157 = vset.pattern.permute.xlu1 %v190_v5 }
   0xb   :  { %39 = vperm.xlu0 %155, %v15_v0   ;;  %35 = vperm.xlu1 %157, %v14_v1  }
   0xc   :  { %49 = vperm.xlu2 %158, %v19_v4  }
  0x13   :  { %66 = vperm.xlu1 %157, %v20_v3   ;;  %160 = vset.pattern.permute.xlu0 %v191_v26 }
  0x14   :  { %159 = vset.pattern.permute.xlu2 %v190_v5  ;;  %102 = vperm.xlu0 %160, %v19_v4  }
  0x15   :  { %62 = vperm.xlu2 %159, %v19_v4  }
  0x5e   :  { %v55_v8 = vpop.permute.xlu2 %54 }
  0x66   :  { %v50_v19 = vpop.permute.xlu2 %49 }
  0x6f   :  { %v63_v27 = vpop.permute.xlu2 %62 }
  0x74   :  { %v29_v6 = vpop.permute.xlu0 %28  ;;  %v24_v7 = vpop.permute.xlu1 %23 }
  0x75   :  { %v33_v13 = vmul.f32 %v161_v9, %v29_v6  ;;  %v32_v14 = vmul.f32 %v161_v9, %v24_v7 }
  0x7d   :  { %v40_v11 = vpop.permute.xlu0 %39  ;;  %v36_v12 = vpop.permute.xlu1 %35 }
  0x7e   :  { %v44_v15 = vmul.f32 %v162_v10, %v40_v11  ;;  %v43_v16 = vmul.f32 %v162_v10, %v36_v12 }
  0x80   :  { %v46_v17 = vadd.f32 %v44_v15, %v33_v13  ;;  %v45_v18 = vadd.f32 %v43_v16, %v32_v14 }
  0x82   :  { %v58_v20 = vadd.f32 %v55_v8, %v46_v17  ;;  %v57_v21 = vadd.f32 %v50_v19, %v45_v18 }
  0x84   :  { %v60_v22 = vmax.f32 %v58_v20, 0.0  ;;  %v59_v23 = vmax.f32 %v57_v21, 0.0 }
  0x85   :  { %v67_v30 = vpop.permute.xlu1 %66 }
  0x86   :  { %90 = vmatpush.msra.mxu0 %v60_v22  ;;  %148 = vmatpush.msra.mxu2 %v60_v22  ;;  %v103_v36 = vpop.permute.xlu0 %102 }
  0x88   :  { %91 = vmatpush.msra.mxu0 %v59_v23  ;;  %149 = vmatpush.msra.mxu2 %v59_v23 }
  0x89   :  { %146 = vmatmul.msk.f32.vlgmr.msra.gmra.mxu2 %vm69_vm0, %v17_v24  ;;  %145 = vmatmul.msk.f32.vlgmr.msra.gmra.mxu0 %vm69_vm0, %v16_v25 }
 0x106   :  { %v93_v28 = vpop.f32.mrf.mxu0 }
 0x107   :  { %v94_v29 = vadd.f32 %v93_v28, %v63_v27 }
 0x109   :  { %v99_v33 = vmax.f32 %v94_v29, 0.0 }
 0x10c   :  { %v96_v31 = vpop.f32.mrf.mxu2 }
 0x10d   :  { %v97_v32 = vadd.f32 %v96_v31, %v67_v30 }
 0x10f   :  { %v100_v34 = vmax.f32 %v97_v32, 0.0 }
 0x111   :  { %122 = vmatpush.msra.mxu1 %v100_v34 }
 0x113   :  { %123 = vmatpush.msra.mxu1 %v99_v33 }
 0x114   :  { %147 = vmatmul.msk.f32.vlgmr.msra.gmra.mxu1 %vm69_vm0, %v18_v35 }
 0x191   :  { %v125_v37 = vpop.f32.mrf.mxu1 }
 0x192   :  { %v126_v38 = vadd.f32 %v125_v37, %v103_v36 }
 0x194   :  { %128 = vst [vmem:[#allocation2] sm:$0x3] %v126_v38 }
 0x195   :  { %139 = dma.vmem_to_hbm [thread:$0]  %s135_s27, 32, %s137_s30, [#allocation3]  }
 0x196   :  { %187 = dma.done.wait [#allocation3], 32  }
 0x197   :  { %188 = vsyncadd [#allocation3], 4294967264 }
 0x198   :  { %144 = vsyncpa [#allocation3], 1 }

</bundles_post_ra>
